<compile_context>
chip_gen: v6e
topology: v6e:2x2x1
jax: 0.10.0
libtpu: 0.0.40
codegen_flags: <defaults>
</compile_context>

<pallas_src>
import functools
import numpy as np
import jax
import jax.numpy as jnp
from jax.experimental import pallas as pl
from jax.experimental.pallas import tpu as pltpu


# -------------------------- global tuning knobs -----------------------------

def _tpu_vmem_bytes():
    try:
        return int(pltpu.get_tpu_info().vmem_capacity_bytes)
    except Exception:
        return 128 * 1024 * 1024


_VMEM_CAP = _tpu_vmem_bytes()
_VMEM_LIMIT = min(int(_VMEM_CAP * 3 // 4), 96 * 1024 * 1024)
# v7x has only 64 MiB VMEM per TensorCore -> smaller matmul tiles there.
_SMALL_VMEM = _VMEM_CAP < 100 * 1024 * 1024
_TM_PREF = 128 if _SMALL_VMEM else 256
_TK_PREF = 256 if _SMALL_VMEM else 512
_TN_PREF = 256


def _tile(dim, pref, align):
    """Largest tile <= pref that is `align`-aligned and divides dim (else full dim)."""
    if dim <= pref:
        return dim
    t = (pref // align) * align
    while t >= align:
        if dim % t == 0:
            return t
        t -= align
    return dim  # TODO(synk): non-divisible huge dims -> switch to cdiv grid + masked tail


# ----------------------------- Pallas kernels ------------------------------

def _matmul_kernel(x_ref, w_ref, b_ref, o_ref, acc_ref, *, activation):
    # Tiled o = act(x @ w + b); bf16 MXU operands, f32 accumulation.
    @pl.when(pl.program_id(2) == 0)
    def _():
        acc_ref[...] = jnp.zeros_like(acc_ref)

    acc_ref[...] += jnp.dot(
        x_ref[...].astype(jnp.bfloat16),
        w_ref[...].astype(jnp.bfloat16),
        preferred_element_type=jnp.float32,
    )

    @pl.when(pl.program_id(2) == pl.num_programs(2) - 1)
    def _():
        y = acc_ref[...] + b_ref[...]
        if activation == "relu":
            y = jnp.maximum(y, 0.0)
        o_ref[...] = y.astype(o_ref.dtype)


def _matmul_res_ln_kernel(x_ref, w_ref, b_ref, r_ref, g_ref, bt_ref, o_ref, acc_ref,
                          *, eps):
    # Tiled o = LayerNorm((x @ w + b) + residual) * g + beta, fused epilogue.
    @pl.when(pl.program_id(1) == 0)
    def _():
        acc_ref[...] = jnp.zeros_like(acc_ref)

    acc_ref[...] += jnp.dot(
        x_ref[...].astype(jnp.bfloat16),
        w_ref[...].astype(jnp.bfloat16),
        preferred_element_type=jnp.float32,
    )

    @pl.when(pl.program_id(1) == pl.num_programs(1) - 1)
    def _():
        y = acc_ref[...] + b_ref[...] + r_ref[...].astype(jnp.float32)
        mean = jnp.mean(y, axis=-1, keepdims=True)
        var = jnp.mean(jnp.square(y - mean), axis=-1, keepdims=True)
        inv = jax.lax.rsqrt(var + eps)
        o_ref[...] = ((y - mean) * inv * g_ref[...] + bt_ref[...]).astype(o_ref.dtype)


def _attn_kernel(*refs, num_heads, scale, masked, cross, d_model):
    # All heads of one batch element. q/k/v come in packed along the lane dim
    # (self: [Sq, 3D] fused QKV; cross: [Sq, D] q + [Sk, 2D] fused KV) and are
    # sliced per head in-kernel -> no plain-JAX split passes over HBM.
    # TODO(synk): for long sequences tile Sk flash-style (online softmax with
    # m/l/acc scratch and grid=(B, Sq/tq)); full Sq x Sk scores are fine here.
    if cross:
        if masked:
            q_ref, kv_ref, m_ref, o_ref, o_acc = refs
        else:
            q_ref, kv_ref, o_ref, o_acc = refs
            m_ref = None
        q_all = q_ref[...]                         # (Sq, D)  bf16
        kv = kv_ref[...]                           # (Sk, 2D) bf16
        k_all = kv[:, :d_model]
        v_all = kv[:, d_model:]
    else:
        if masked:
            qkv_ref, m_ref, o_ref, o_acc = refs
        else:
            qkv_ref, o_ref, o_acc = refs
            m_ref = None
        qkv = qkv_ref[...]                         # (Sq, 3D) bf16
        q_all = qkv[:, :d_model]
        k_all = qkv[:, d_model:2 * d_model]
        v_all = qkv[:, 2 * d_model:]

    mask_add = m_ref[...] if m_ref is not None else None   # hoisted out of head loop
    Dh = d_model // num_heads

    for h in range(num_heads):                     # static unroll over heads
        sl = slice(h * Dh, (h + 1) * Dh)
        qh = q_all[:, sl] * scale                  # fold scale into the small q tile
        kh = k_all[:, sl]
        vh = v_all[:, sl]
        # contraction on last dims -> MXU, no explicit transpose
        s = jax.lax.dot_general(qh, kh, (((1,), (1,)), ((), ())),
                                preferred_element_type=jnp.float32)
        if mask_add is not None:
            s = s + mask_add
        m = jnp.max(s, axis=-1, keepdims=True)
        p = jnp.exp(s - m)
        l = jnp.sum(p, axis=-1, keepdims=True)
        # guard: fully-masked row -> p == 0 everywhere -> output 0 (no NaN)
        inv = pl.reciprocal(jnp.maximum(l, 1e-30), approx=True)
        o_h = jnp.dot(p.astype(vh.dtype), vh, preferred_element_type=jnp.float32) * inv
        o_acc[:, sl] = o_h                         # write into VMEM scratch slice

    # single lane-dense store of the packed (Sq, D) output
    o_ref[...] = o_acc[...].astype(o_ref.dtype)


# ----------------------------- Pallas wrappers -----------------------------

def matmul(x2d, w, b, *, activation=None, out_dtype=jnp.bfloat16):
    M, K = x2d.shape
    N = w.shape[1]
    tm = _tile(M, _TM_PREF, 8)
    tn = _tile(N, _TN_PREF, 128)
    tk = _tile(K, _TK_PREF, 128)
    return pl.pallas_call(
        functools.partial(_matmul_kernel, activation=activation),
        out_shape=jax.ShapeDtypeStruct((M, N), out_dtype),
        grid=(M // tm, N // tn, K // tk),
        in_specs=[
            pl.BlockSpec((tm, tk), lambda i, j, k: (i, k)),
            pl.BlockSpec((tk, tn), lambda i, j, k: (k, j)),
            pl.BlockSpec((1, tn), lambda i, j, k: (0, j)),
        ],
        out_specs=pl.BlockSpec((tm, tn), lambda i, j, k: (i, j)),
        scratch_shapes=[pltpu.VMEM((tm, tn), jnp.float32)],
        compiler_params=pltpu.CompilerParams(
            dimension_semantics=("parallel", "parallel", "arbitrary"),
            vmem_limit_bytes=_VMEM_LIMIT),
    )(x2d, w, b.reshape(1, N))


def matmul_res_ln(x2d, w, b, res2d, g, beta, *, eps=1e-5):
    # out = LayerNorm(x @ w + b + residual) in f32, emitted as bf16.
    # N (= d_model) kept whole so LN can reduce over it in one epilogue.
    M, K = x2d.shape
    N = w.shape[1]
    tm = _tile(M, _TM_PREF, 8)
    tk = _tile(K, _TK_PREF, 128)
    return pl.pallas_call(
        functools.partial(_matmul_res_ln_kernel, eps=eps),
        out_shape=jax.ShapeDtypeStruct((M, N), jnp.bfloat16),
        grid=(M // tm, K // tk),
        in_specs=[
            pl.BlockSpec((tm, tk), lambda i, k: (i, k)),
            pl.BlockSpec((tk, N), lambda i, k: (k, 0)),
            pl.BlockSpec((1, N), lambda i, k: (0, 0)),
            pl.BlockSpec((tm, N), lambda i, k: (i, 0)),
            pl.BlockSpec((1, N), lambda i, k: (0, 0)),
            pl.BlockSpec((1, N), lambda i, k: (0, 0)),
        ],
        out_specs=pl.BlockSpec((tm, N), lambda i, k: (i, 0)),
        scratch_shapes=[pltpu.VMEM((tm, N), jnp.float32)],
        compiler_params=pltpu.CompilerParams(
            dimension_semantics=("parallel", "arbitrary"),
            vmem_limit_bytes=_VMEM_LIMIT),
    )(x2d, w, b.reshape(1, N), res2d, g.reshape(1, N), beta.reshape(1, N))


def _prep_mask(mask):
    # PyTorch convention for bool masks: True = position is NOT allowed.
    if mask.dtype == jnp.bool_:
        return jnp.where(mask, jnp.float32(-1e30), jnp.float32(0.0))
    return mask.astype(jnp.float32)


def _attention_call(args, in_specs, out_shape, kernel, scratch, grid):
    return pl.pallas_call(
        kernel,
        out_shape=out_shape,
        grid=grid,
        in_specs=in_specs,
        out_specs=pl.BlockSpec((None,) + out_shape.shape[1:], lambda b: (b, 0, 0)),
        scratch_shapes=scratch,
        compiler_params=pltpu.CompilerParams(
            dimension_semantics=("parallel",),
            vmem_limit_bytes=_VMEM_LIMIT),
    )(*args)


def self_attention(qkv, mask, num_heads, d_model):
    # qkv: [B, S, 3D] bf16 (fused projection output) -> [B, S, D] bf16.
    B, S, D3 = qkv.shape
    D = d_model
    scale = 1.0 / float(np.sqrt(D // num_heads))
    masked = mask is not None

    in_specs = [pl.BlockSpec((None, S, D3), lambda b: (b, 0, 0))]
    args = [qkv]
    if masked:
        mask = _prep_mask(mask)
        in_specs.append(pl.BlockSpec(mask.shape, lambda b: (0, 0)))
        args.append(mask)

    kernel = functools.partial(_attn_kernel, num_heads=num_heads, scale=scale,
                               masked=masked, cross=False, d_model=D)
    return _attention_call(
        args, in_specs, jax.ShapeDtypeStruct((B, S, D), jnp.bfloat16), kernel,
        [pltpu.VMEM((S, D), jnp.float32)], (B,))


def cross_attention(q, kv, mask, num_heads, d_model):
    # q: [B, Sq, D] bf16, kv: [B, Sk, 2D] bf16 (fused KV projection) -> [B, Sq, D].
    B, Sq, D = q.shape
    Sk = kv.shape[1]
    scale = 1.0 / float(np.sqrt(D // num_heads))
    masked = mask is not None

    in_specs = [pl.BlockSpec((None, Sq, D), lambda b: (b, 0, 0)),
                pl.BlockSpec((None, Sk, 2 * D), lambda b: (b, 0, 0))]
    args = [q, kv]
    if masked:
        mask = _prep_mask(mask)
        in_specs.append(pl.BlockSpec(mask.shape, lambda b: (0, 0)))
        args.append(mask)

    kernel = functools.partial(_attn_kernel, num_heads=num_heads, scale=scale,
                               masked=masked, cross=True, d_model=D)
    return _attention_call(
        args, in_specs, jax.ShapeDtypeStruct((B, Sq, D), jnp.bfloat16), kernel,
        [pltpu.VMEM((Sq, D), jnp.float32)], (B,))


# ----------------------------- transformer blocks ---------------------------

def self_attention_block(p, ln, x, mask, num_heads):
    B, S, D = x.shape
    M = B * S
    qkv = matmul(x.reshape(M, D), p["wqkv"], p["bqkv"]).reshape(B, S, 3 * D)
    attn = self_attention(qkv, mask, num_heads, D)
    out = matmul_res_ln(attn.reshape(M, D), p["wo"], p["bo"],
                        x.reshape(M, D), ln["g"], ln["b"])
    return out.reshape(B, S, D)


def cross_attention_block(p, ln, x_q, memory, mask, num_heads):
    B, Sq, D = x_q.shape
    Sk = memory.shape[1]
    Mq, Mk = B * Sq, B * Sk
    q = matmul(x_q.reshape(Mq, D), p["wq"], p["bq"]).reshape(B, Sq, D)
    kv = matmul(memory.reshape(Mk, D), p["wkv"], p["bkv"]).reshape(B, Sk, 2 * D)
    attn = cross_attention(q, kv, mask, num_heads, D)
    out = matmul_res_ln(attn.reshape(Mq, D), p["wo"], p["bo"],
                        x_q.reshape(Mq, D), ln["g"], ln["b"])
    return out.reshape(B, Sq, D)


def ffn_block(p, ln, x):
    B, S, D = x.shape
    M = B * S
    h = matmul(x.reshape(M, D), p["w1"], p["b1"], activation="relu")
    out = matmul_res_ln(h, p["w2"], p["b2"], x.reshape(M, D), ln["g"], ln["b"])
    return out.reshape(B, S, D)


# -------------------------- parameters / model glue -------------------------

def sinusoidal_pe(max_len, d_model):
    pos = np.arange(max_len)[:, None].astype(np.float64)
    i = np.arange(d_model)[None, :].astype(np.float64)
    angle = pos / np.power(10000.0, (2.0 * (i // 2)) / d_model)
    pe = np.zeros((max_len, d_model), np.float64)
    pe[:, 0::2] = np.sin(angle[:, 0::2])
    pe[:, 1::2] = np.cos(angle[:, 1::2])
    return jnp.asarray(pe, jnp.float32)


def init_params(key, src_vocab, tgt_vocab, d_model, num_layers, num_heads, d_ff, max_len):
    keys = iter(jax.random.split(key, 4096))

    def w(shape, scale=0.02, dtype=jnp.bfloat16):
        return (jax.random.normal(next(keys), shape, jnp.float32) * scale).astype(dtype)

    def self_mha():
        return {"wqkv": w((d_model, 3 * d_model)),           # fused Q/K/V projection
                "bqkv": jnp.zeros((3 * d_model,), jnp.float32),
                "wo": w((d_model, d_model)),
                "bo": jnp.zeros((d_model,), jnp.float32)}

    def cross_mha():
        return {"wq": w((d_model, d_model)),
                "bq": jnp.zeros((d_model,), jnp.float32),
                "wkv": w((d_model, 2 * d_model)),             # fused K/V projection
                "bkv": jnp.zeros((2 * d_model,), jnp.float32),
                "wo": w((d_model, d_model)),
                "bo": jnp.zeros((d_model,), jnp.float32)}

    def ln():
        return {"g": jnp.ones((d_model,), jnp.float32),
                "b": jnp.zeros((d_model,), jnp.float32)}

    def ffn():
        return {"w1": w((d_model, d_ff)), "b1": jnp.zeros((d_ff,), jnp.float32),
                "w2": w((d_ff, d_model)), "b2": jnp.zeros((d_model,), jnp.float32)}

    enc_layers = [{"attn": self_mha(), "ln1": ln(), "ffn": ffn(), "ln2": ln()}
                  for _ in range(num_layers)]
    dec_layers = [{"self_attn": self_mha(), "ln1": ln(),
                   "cross_attn": cross_mha(), "ln2": ln(),
                   "ffn": ffn(), "ln3": ln()}
                  for _ in range(num_layers)]

    v_pad = ((tgt_vocab + 127) // 128) * 128   # lane-dense vocab-projection output

    return {
        "enc_emb": w((src_vocab, d_model), scale=1.0, dtype=jnp.float32),
        "dec_emb": w((tgt_vocab, d_model), scale=1.0, dtype=jnp.float32),
        "pe": sinusoidal_pe(max_len, d_model),
        "enc_layers": enc_layers,
        "dec_layers": dec_layers,
        "out_proj": {"w": w((d_model, v_pad)),
                     "b": jnp.zeros((v_pad,), jnp.float32)},
        "tgt_vocab": tgt_vocab,
    }


def transformer_forward(params, num_heads, src, tgt,
                        src_mask=None, tgt_mask=None, memory_mask=None):
    pe = params["pe"]

    # ---- encoder ----
    # TODO(synk): embedding gather has no clean rectangular BlockSpec form; jnp.take glue.
    x = (jnp.take(params["enc_emb"], src, axis=0)
         + pe[: src.shape[1]][None]).astype(jnp.bfloat16)
    for layer in params["enc_layers"]:
        x = self_attention_block(layer["attn"], layer["ln1"], x, src_mask, num_heads)
        x = ffn_block(layer["ffn"], layer["ln2"], x)
    enc_out = x

    # ---- decoder ----
    y = (jnp.take(params["dec_emb"], tgt, axis=0)
         + pe[: tgt.shape[1]][None]).astype(jnp.bfloat16)
    for layer in params["dec_layers"]:
        y = self_attention_block(layer["self_attn"], layer["ln1"], y, tgt_mask, num_heads)
        y = cross_attention_block(layer["cross_attn"], layer["ln2"], y, enc_out,
                                  memory_mask, num_heads)
        y = ffn_block(layer["ffn"], layer["ln3"], y)

    # ---- output projection (kernel writes padded 128-lane multiple; tail sliced once) ----
    B, S, D = y.shape
    logits = matmul(y.reshape(B * S, D),
                    params["out_proj"]["w"], params["out_proj"]["b"],
                    out_dtype=jnp.float32)
    logits = logits[:, : params["tgt_vocab"]]
    return logits.reshape(B, S, -1)


# ----------------------------------- main -----------------------------------

if __name__ == "__main__":
    # Small config consistent with Transformer(__init__) signature.
    src_vocab = 50
    tgt_vocab = 50
    d_model = 32
    num_layers = 2
    num_heads = 4
    d_ff = 64
    max_len = 32
    batch, seq = 2, 8

    key = jax.random.PRNGKey(0)
    k_src, k_tgt, k_par = jax.random.split(key, 3)

    src = jax.random.randint(k_src, (batch, seq), 0, src_vocab, dtype=jnp.int32)
    tgt = jax.random.randint(k_tgt, (batch, seq), 0, tgt_vocab, dtype=jnp.int32)

    params = init_params(k_par, src_vocab, tgt_vocab, d_model,
                         num_layers, num_heads, d_ff, max_len)

    # forward(src, tgt) with default None masks, matching the PyTorch module call.
    logits = transformer_forward(params, num_heads, src, tgt)
    logits = jax.block_until_ready(logits)

    assert logits.shape == (batch, seq, tgt_vocab)
    assert bool(jnp.all(jnp.isfinite(logits)))
    print("KERNEL_OK")
</pallas_src>

<mosaic_0001>
module attributes {stable_mosaic.version = 11 : i64} {
  func.func @_matmul_kernel(%arg0: i32, %arg1: i32, %arg2: i32, %arg3: memref<16x32xbf16, #tpu.memory_space<vmem>>, %arg4: memref<32x96xbf16, #tpu.memory_space<vmem>>, %arg5: memref<1x96xf32, #tpu.memory_space<vmem>>, %arg6: memref<16x96xbf16, #tpu.memory_space<vmem>>, %arg7: memref<16x96xf32, #tpu.memory_space<vmem>>) attributes {dimension_semantics = [#tpu.dimension_semantics<parallel>, #tpu.dimension_semantics<parallel>, #tpu.dimension_semantics<arbitrary>], iteration_bounds = array<i64: 1, 1, 1>, scalar_prefetch = 0 : i64, scratch_operands = 1 : i64, tpu.core_type = #tpu.core_type<tc>, window_params = [{transform_indices = @transform_0, window_bounds = array<i64: 16, 32>}, {transform_indices = @transform_1, window_bounds = array<i64: 32, 96>}, {transform_indices = @transform_2, window_bounds = array<i64: 1, 96>}, {transform_indices = @transform_3, window_bounds = array<i64: 16, 96>}]} {
    %c0_i32 = arith.constant 0 : i32
    %0 = arith.cmpi eq, %arg2, %c0_i32 : i32
    %1 = arith.extui %0 : i1 to i32
    %c0_i32_0 = arith.constant 0 : i32
    %2 = arith.cmpi ne, %1, %c0_i32_0 : i32
    scf.if %2 {
      %cst_10 = arith.constant 0.000000e+00 : f32
      %12 = vector.broadcast %cst_10 : f32 to vector<16x96xf32>
      %c0_11 = arith.constant 0 : index
      %c0_12 = arith.constant 0 : index
      %13 = vector.load %arg7[%c0_11, %c0_12] : memref<16x96xf32, #tpu.memory_space<vmem>>, vector<16x96xf32>
      tpu.vector_store %arg7[%c0_11, %c0_12], %12 {strides = array<i32>} : memref<16x96xf32, #tpu.memory_space<vmem>>, vector<16x96xf32>,
    } else {
    }
    %c0 = arith.constant 0 : index
    %c0_1 = arith.constant 0 : index
    %3 = vector.load %arg7[%c0, %c0_1] : memref<16x96xf32, #tpu.memory_space<vmem>>, vector<16x96xf32>
    %c0_2 = arith.constant 0 : index
    %c0_3 = arith.constant 0 : index
    %4 = vector.load %arg3[%c0_2, %c0_3] : memref<16x32xbf16, #tpu.memory_space<vmem>>, vector<16x32xbf16>
    %c0_4 = arith.constant 0 : index
    %c0_5 = arith.constant 0 : index
    %5 = vector.load %arg4[%c0_4, %c0_5] : memref<32x96xbf16, #tpu.memory_space<vmem>>, vector<32x96xbf16>
    %cst = arith.constant dense<0.000000e+00> : vector<16x96xf32>
    %6 = tpu.matmul %4, %5, %cst {dimension_numbers = #tpu.dot_dimension_numbers<[1], [0], [0], [1], [0, 0, 1, 1], [], []>} : vector<16x32xbf16>, vector<32x96xbf16>, vector<16x96xf32> -> vector<16x96xf32>
    %7 = arith.addf %3, %6 : vector<16x96xf32>
    %c0_6 = arith.constant 0 : index
    %c0_7 = arith.constant 0 : index
    %8 = vector.load %arg7[%c0_6, %c0_7] : memref<16x96xf32, #tpu.memory_space<vmem>>, vector<16x96xf32>
    tpu.vector_store %arg7[%c0_6, %c0_7], %7 {strides = array<i32>} : memref<16x96xf32, #tpu.memory_space<vmem>>, vector<16x96xf32>,
    %c0_i32_8 = arith.constant 0 : i32
    %9 = arith.cmpi eq, %arg2, %c0_i32_8 : i32
    %10 = arith.extui %9 : i1 to i32
    %c0_i32_9 = arith.constant 0 : i32
    %11 = arith.cmpi ne, %10, %c0_i32_9 : i32
    scf.if %11 {
      %c0_10 = arith.constant 0 : index
      %c0_11 = arith.constant 0 : index
      %12 = vector.load %arg7[%c0_10, %c0_11] : memref<16x96xf32, #tpu.memory_space<vmem>>, vector<16x96xf32>
      %c0_12 = arith.constant 0 : index
      %c0_13 = arith.constant 0 : index
      %13 = vector.load %arg5[%c0_12, %c0_13] : memref<1x96xf32, #tpu.memory_space<vmem>>, vector<1x96xf32>
      %14 = vector.broadcast %13 : vector<1x96xf32> to vector<16x96xf32>
      %15 = arith.addf %12, %14 : vector<16x96xf32>
      %16 = arith.truncf %15 : vector<16x96xf32> to vector<16x96xbf16>
      %c0_14 = arith.constant 0 : index
      %c0_15 = arith.constant 0 : index
      %17 = vector.load %arg6[%c0_14, %c0_15] : memref<16x96xbf16, #tpu.memory_space<vmem>>, vector<16x96xbf16>
      tpu.vector_store %arg6[%c0_14, %c0_15], %16 {strides = array<i32>} : memref<16x96xbf16, #tpu.memory_space<vmem>>, vector<16x96xbf16>,
    } else {
    }
    return
  }
  func.func @transform_0(%arg0: i32, %arg1: i32, %arg2: i32) -> (i32, i32) {
    %c0_i32 = arith.constant 0 : i32
    return %arg0, %arg2 : i32, i32
  }
  func.func @transform_1(%arg0: i32, %arg1: i32, %arg2: i32) -> (i32, i32) {
    %c0_i32 = arith.constant 0 : i32
    return %arg2, %arg1 : i32, i32
  }
  func.func @transform_2(%arg0: i32, %arg1: i32, %arg2: i32) -> (i32, i32) {
    %c0_i32 = arith.constant 0 : i32
    %c0_i32_0 = arith.constant 0 : i32
    return %c0_i32, %arg1 : i32, i32
  }
  func.func @transform_3(%arg0: i32, %arg1: i32, %arg2: i32) -> (i32, i32) {
    %c0_i32 = arith.constant 0 : i32
    return %arg0, %arg1 : i32, i32
  }
}

</mosaic_0001>

<bundles_post_ra>
// kernel: tpu_custom_call.1
= control target key start
LH: loop header
LB: loop body
LE: loop exit
PB: predicated region body
PF: predicated region fallthrough
CT: control target
= control target key end

     0   :  { %8 = vsyncpa [#allocation4], 0  ;;  %s317_s0 = inlined_call_operand.hbm [shape: bf16[16,32], index: 0, kind: input, shape index: {}]   ;;  %s318_s1 = inlined_call_operand.hbm [shape: bf16[32,96], index: 1, kind: input, shape index: {}]   ;;  %s319_s2 = inlined_call_operand.vmem [shape: f32[1,96], index: 2, kind: input, shape index: {}]   ;;  %s320_s3 = inlined_call_operand.hbm [shape: bf16[16,96], index: 3, kind: output, shape index: {}]  }
   0x1   :  { %9 = vsyncpa [#allocation7], 0 }
   0x2   :  { %10 = vsyncpa [#allocation5], 0  ;;  %s265_s12 = smov [#allocation3]  }
   0x3   :  { %s16_s13 = sshll.u32 %s265_s12, 4  ;;  %s17_s13 = int_to_ptr.vmem [resolvable:$true] %s16_s13 }
   0x4   :  { %s207_s14 = scalar_lea.vmem %s17_s13, 128  ;;  %p212_p1 = scmp.lt.s32.totalorder %s17_s13, %s17_s13 }
   0x5   :  { %p208_p0 = scmp.ne.s32.totalorder %s17_s13, %s207_s14  ;;  %p213_p2 = scmp.lt.s32.totalorder %s207_s14, %s207_s14 }
   0x7   :  { %p214_p3 = por %p213_p2, %p212_p1 }
   0x9   :  { %p215_p4 = pnand %p214_p3, %p208_p0 }
   0xb   :  { %218 = shalt.err (!%p215_p4)
}
   0xc   :  { %s266_s15 = smov 64   ;;  %s267_s16 = smov 4  }
   0xd   :  { %22 = dma.hbm_to_vmem [thread:$0]  %s317_s0, 128, %s17_s13, [#allocation4], %s266_s15, %s266_s15, %s267_s16  }
   0xe   :  { %s268_s19 = smov [#allocation6]  }
   0xf   :  { %s28_s20 = sshll.u32 %s268_s19, 4  ;;  %s29_s20 = int_to_ptr.vmem [resolvable:$true] %s28_s20 }
  0x10   :  { %s227_s21 = scalar_lea.vmem %s29_s20, 256  ;;  %p232_p6 = scmp.lt.s32.totalorder %s29_s20, %s29_s20 }
  0x11   :  { %p228_p5 = scmp.ne.s32.totalorder %s29_s20, %s227_s21  ;;  %p233_p7 = scmp.lt.s32.totalorder %s227_s21, %s227_s21 }
  0x13   :  { %p234_p8 = por %p233_p7, %p232_p6 }
  0x15   :  { %p235_p9 = pnand %p234_p8, %p228_p5 }
  0x17   :  { %238 = shalt.err (!%p235_p9)
}
  0x18   :  { %34 = dma.hbm_to_vmem [thread:$0]  %s318_s1, 256, %s29_s20, [#allocation7], %s266_s15, %s266_s15, %s267_s16  }
  0x19   :  { %259 = dma.done.wait [#allocation4], 128  }
  0x1a   :  { %260 = vsyncadd [#allocation4], 4294967168 }
  0x1b   :  { %261 = dma.done.wait [#allocation7], 256  }
  0x1c   :  { %262 = vsyncadd [#allocation7], 4294967040  ;;  %vm48_vm0 = vcmask 785408   ;;  %v269_v0 = vmov 0.0   ;;  %vm270_vm1 = vmmov 0   ;;  %v196_v1 = vld [vmem:[#allocation6 + $0x8] sm:$0xff]  }
  0x1d   :  { %49 = vst.msk [vmem:[#allocation2] sm:$0xff] %vm48_vm0, %v269_v0  ;;  %50 = vst.msk [vmem:[#allocation2 + $0x8] sm:$0xff] %vm48_vm0, %v269_v0  ;;  %181 = vmatprep.subr.bf16.mxu0 %v269_v0  ;;  %185 = vmatprep.mubr.msk.bf16.mxu0 %vm270_vm1, %v269_v0  ;;  %v197_v2 = vld [vmem:[#allocation6] sm:$0xff]   ;;  %v198_v3 = vld [vmem:[#allocation3] sm:$0xff]   ;;  %vm76_vm2 = vcmask 261120   ;;  %vm148_vm3 = vcmask 781312  }
  0x1e   :  { %182 = vmatpush3.bf16.msra.mxu0 %v196_v1  ;;  %v173_v12 = vld [vmem:[%s319_s2] ss:$0 sm:$0xff]  ;;  %s271_s24 = smov [#allocation8]  }
  0x1f   :  { %183 = vmatprep.subr.bf16.mxu0 %v269_v0  ;;  %s156_s25 = sshll.u32 %s271_s24, 4  ;;  %s157_s25 = int_to_ptr.vmem [resolvable:$true] %s156_s25 }
  0x20   :  { %s239_s26 = scalar_lea.vmem %s157_s25, 128  ;;  %p244_p11 = scmp.lt.s32.totalorder %s157_s25, %s157_s25 }
  0x21   :  { %p240_p10 = scmp.ne.s32.totalorder %s157_s25, %s239_s26  ;;  %p245_p12 = scmp.lt.s32.totalorder %s239_s26, %s239_s26 }
  0x22   :  { %184 = vmatpush3.bf16.msra.mxu0 %v197_v2 }
  0x23   :  { %p246_p13 = por %p245_p12, %p244_p11 }
  0x24   :  { %v51_v4 = vld [vmem:[#allocation2] sm:$0xff]  ;;  %v52_v8 = vld [vmem:[#allocation2 + $0x8] sm:$0xff] }
  0x25   :  { %186 = vmatmul.mubr.msk.bf16.vlgmr.msra.gmra.mxu0 %vm76_vm2, %v198_v3  ;;  %p247_p0 = pnand %p246_p13, %p240_p10 }
  0xe5   :  { %v114_v5 = vpop.f32.mrf.mxu0 }
  0xe6   :  { %v121_v6 = vadd.f32 %v114_v5, %v51_v4 }
  0xe7   :  { %v187_v7 = vpop.f32.mrf.mxu0 }
  0xe8   :  { %124 = vst.msk [vmem:[#allocation2] sm:$0xff] %vm48_vm0, %v121_v6 }
  0xe9   :  { %v117_v9 = vpop.f32.mrf.mxu0 }
  0xea   :  { %v122_v10 = vadd.f32 %v117_v9, %v52_v8 }
  0xeb   :  { %v188_v11 = vpop.f32.mrf.mxu0 }
  0xec   :  { %125 = vst.msk [vmem:[#allocation2 + $0x8] sm:$0xff] %vm48_vm0, %v122_v10 }
  0xef   :  { %v129_v13 = vld [vmem:[#allocation2] sm:$0xff] }
  0xf0   :  { %v138_v14 = vadd.f32 %v173_v12, %v129_v13 }
  0xf2   :  { %v176_v15 = vpack.c.bf16 %v138_v14, %v138_v14 }
  0xf3   :  { %v130_v16 = vld [vmem:[#allocation2 + $0x8] sm:$0xff] }
  0xf4   :  { %v139_v17 = vadd.f32 %v173_v12, %v130_v16  ;;  %149 = vst.msk [vmem:[#allocation8] sm:$0xf] %vm148_vm3, %v176_v15 }
  0xf6   :  { %v177_v18 = vpack.c.bf16 %v139_v17, %v139_v17 }
  0xf8   :  { %150 = vst.msk [vmem:[#allocation8 + $0x4] sm:$0xf] %vm148_vm3, %v177_v18 }
  0xf9   :  { %250 = shalt.err (!%p247_p0)
}
  0xfa   :  { %162 = dma.vmem_to_hbm [thread:$0]  %s157_s25, 128, %s320_s3, [#allocation5], %s266_s15, %s266_s15, %s267_s16  }
  0xfb   :  { %263 = dma.done.wait [#allocation5], 128  }
  0xfc   :  { %264 = vsyncadd [#allocation5], 4294967168 }
  0xfd   :  { %166 = vsyncpa [#allocation4], 1 }
  0xfe   :  { %167 = vsyncpa [#allocation7], 1 }
  0xff   :  { %168 = vsyncpa [#allocation5], 1 }

</bundles_post_ra>
